<compile_context>
chip_gen: v7x
topology: tpu7x:2x2x1
jax: 0.10.0
libtpu: 0.0.40
codegen_flags: <defaults>
</compile_context>

<pallas_src>
import jax
import jax.numpy as jnp
from jax.experimental import pallas as pl
from jax.experimental.pallas import tpu as pltpu


# --------------------------------------------------------------------------
# Kernel 1: conditioning MLP (runs once; small (B,D) matmuls on the MXU).
# --------------------------------------------------------------------------
def _cond_mlp_kernel(cond_ref, w1_ref, b1_ref, w2_ref, b2_ref,
                     shift_msa_ref, one_plus_scale_ref, gate_msa_ref,
                     shift_mlp_ref, scale_mlp_ref, gate_mlp_ref):
    cond = cond_ref[...].astype(jnp.float32)
    h = jnp.dot(cond, w1_ref[...].astype(jnp.float32),
                preferred_element_type=jnp.float32)
    h = h + b1_ref[...].astype(jnp.float32)
    h = h * jax.nn.sigmoid(h)                                   # SiLU

    def chunk(k):
        # w2_ref: (6, D, D), b2_ref: (6, 1, D) -- leading-axis split is free
        # (no lane-axis slicing / XLU relayouts).
        return (jnp.dot(h, w2_ref[k].astype(jnp.float32),
                        preferred_element_type=jnp.float32)
                + b2_ref[k].astype(jnp.float32))

    # fp32 internals consumed by the tiled LN/modulate kernel, shaped
    # (B, 1, D) so their BlockSpec stays (8,128)-legal.
    shift_msa_ref[...] = chunk(0)[:, None, :]
    one_plus_scale_ref[...] = (1.0 + chunk(1))[:, None, :]
    # user-visible outputs of the module
    gate_msa_ref[...] = chunk(2).astype(gate_msa_ref.dtype)
    shift_mlp_ref[...] = chunk(3).astype(shift_mlp_ref.dtype)
    scale_mlp_ref[...] = chunk(4).astype(scale_mlp_ref.dtype)
    gate_mlp_ref[...] = chunk(5).astype(gate_mlp_ref.dtype)


# --------------------------------------------------------------------------
# Kernel 2: per-row LayerNorm(eps=1e-6, no affine) + adaLN modulation.
# Pure VPU / memory work -> HBM-bandwidth bound; tiled over (batch, seq).
# --------------------------------------------------------------------------
def _ln_modulate_kernel(x_ref, shift_ref, one_plus_scale_ref, xo_ref):
    x = x_ref[...].astype(jnp.float32)                          # (1, tT, D)
    mean = jnp.mean(x, axis=-1, keepdims=True)
    var = jnp.mean(jnp.square(x - mean), axis=-1, keepdims=True)
    x_norm = (x - mean) * jax.lax.rsqrt(var + 1e-6)
    # (1, 1, D) modulation rows broadcast over the tile's sequence rows;
    # (1 + scale) is precomputed once outside the hot loop.
    x_mod = x_norm * one_plus_scale_ref[...] + shift_ref[...]
    xo_ref[...] = x_mod.astype(xo_ref.dtype)


def _pick_seq_tile(T, D, itemsize):
    """Largest multiple-of-8 divisor of T whose x tile stays ~<= 4 MiB.

    Keeps double-buffered in+out tiles well inside v7x's 64 MiB VMEM while
    still amortizing the ~0.35 us per-grid-step overhead on v5e/v6e.
    """
    max_rows = max(8, (4 * 1024 * 1024) // max(1, D * itemsize))
    for cand in (2048, 1024, 512, 256, 128, 64, 32, 16, 8):
        if cand <= max_rows and T % cand == 0:
            return cand
    return T  # tiny / awkward T: whole sequence in one block


def ada_layer_norm_zero(x, cond, emb_weight, emb_bias, linear_weight, linear_bias):
    """adaLN-Zero forward.

    Args (PyTorch nn.Linear layout, weight = (out_features, in_features)):
      x:             (B, T, D) hidden states.
      cond:          (B, D)    conditioning embedding.
      emb_weight:    (D, D),   emb_bias:    (D,)
      linear_weight: (6D, D),  linear_bias: (6D,)
    Returns:
      (x_mod, gate_msa, shift_mlp, scale_mlp, gate_mlp) -- same as PyTorch.
    """
    B, T, D = x.shape
    assert cond.shape == (B, D)

    # Layout plumbing (plain JAX): pre-transpose weights and split the 6*D
    # output dimension onto a leading axis.
    w1 = emb_weight.T                                        # (D, D)
    b1 = emb_bias.reshape(1, D)                              # (1, D)
    w2_6 = linear_weight.reshape(6, D, D).transpose(0, 2, 1)  # (6, D, D)
    b2_6 = linear_bias.reshape(6, 1, D)                       # (6, 1, D)

    def full_spec(shape):
        return pl.BlockSpec(shape, lambda *_: (0,) * len(shape))

    mlp_out_shape = (
        jax.ShapeDtypeStruct((B, 1, D), jnp.float32),   # shift_msa   (internal)
        jax.ShapeDtypeStruct((B, 1, D), jnp.float32),   # 1+scale_msa (internal)
        jax.ShapeDtypeStruct((B, D), cond.dtype),       # gate_msa
        jax.ShapeDtypeStruct((B, D), cond.dtype),       # shift_mlp
        jax.ShapeDtypeStruct((B, D), cond.dtype),       # scale_mlp
        jax.ShapeDtypeStruct((B, D), cond.dtype),       # gate_mlp
    )
    (shift_msa, one_plus_scale,
     gate_msa, shift_mlp, scale_mlp, gate_mlp) = pl.pallas_call(
        _cond_mlp_kernel,
        out_shape=mlp_out_shape,
        grid=(1,),
        in_specs=[
            full_spec((B, D)),
            full_spec((D, D)),
            full_spec((1, D)),
            full_spec((6, D, D)),
            full_spec((6, 1, D)),
        ],
        out_specs=[
            full_spec((B, 1, D)),
            full_spec((B, 1, D)),
            full_spec((B, D)),
            full_spec((B, D)),
            full_spec((B, D)),
            full_spec((B, D)),
        ],
        compiler_params=pltpu.CompilerParams(
            dimension_semantics=("arbitrary",)),
    )(cond, w1, b1, w2_6, b2_6)

    # ---- tiled LayerNorm + modulation over (batch, sequence) ----
    itemsize = jnp.dtype(x.dtype).itemsize
    tile_t = _pick_seq_tile(T, D, itemsize)
    grid = (B, T // tile_t)

    # VMEM budget: double-buffered in/out tiles + fp32 temporaries + slack,
    # capped well below v7x's 64 MiB physical VMEM.
    tile_bytes = tile_t * D * itemsize
    vmem_limit = int(min(max(10 * tile_bytes + (2 << 20), 16 << 20), 48 << 20))

    xo = pl.pallas_call(
        _ln_modulate_kernel,
        out_shape=jax.ShapeDtypeStruct((B, T, D), x.dtype),
        grid=grid,
        in_specs=[
            pl.BlockSpec((1, tile_t, D), lambda b, t: (b, t, 0)),
            pl.BlockSpec((1, 1, D), lambda b, t: (b, 0, 0)),
            pl.BlockSpec((1, 1, D), lambda b, t: (b, 0, 0)),
        ],
        out_specs=pl.BlockSpec((1, tile_t, D), lambda b, t: (b, t, 0)),
        compiler_params=pltpu.CompilerParams(
            dimension_semantics=("parallel", "parallel"),
            vmem_limit_bytes=vmem_limit),
    )(x, shift_msa, one_plus_scale)

    return xo, gate_msa, shift_mlp, scale_mlp, gate_mlp


def _reference(x, cond, emb_weight, emb_bias, linear_weight, linear_bias):
    # Pure-JAX reference mirroring the PyTorch forward.
    h = cond.astype(jnp.float32) @ emb_weight.T + emb_bias
    h = h * jax.nn.sigmoid(h)
    emb = h @ linear_weight.T + linear_bias
    shift_msa, scale_msa, gate_msa, shift_mlp, scale_mlp, gate_mlp = jnp.split(
        emb, 6, axis=-1)
    xf = x.astype(jnp.float32)
    mean = jnp.mean(xf, axis=-1, keepdims=True)
    var = jnp.mean(jnp.square(xf - mean), axis=-1, keepdims=True)
    xn = (xf - mean) * jax.lax.rsqrt(var + 1e-6)
    xo = xn * (1.0 + scale_msa[:, None, :]) + shift_msa[:, None, :]
    return xo, gate_msa, shift_mlp, scale_mlp, gate_mlp


if __name__ == "__main__":
    B, T, D = 2, 8, 32   # small demo shapes; real D should be a multiple of 128
    key = jax.random.PRNGKey(0)
    kx, kc, kw1, kb1, kw2, kb2 = jax.random.split(key, 6)

    x = jax.random.normal(kx, (B, T, D), dtype=jnp.float32)
    cond = jax.random.normal(kc, (B, D), dtype=jnp.float32)

    # nn.Linear params, PyTorch layout (out_features, in_features).
    emb_weight = jax.random.normal(kw1, (D, D), dtype=jnp.float32) * 0.05
    emb_bias = jax.random.normal(kb1, (D,), dtype=jnp.float32) * 0.05
    linear_weight = jax.random.normal(kw2, (6 * D, D), dtype=jnp.float32) * 0.05
    linear_bias = jax.random.normal(kb2, (6 * D,), dtype=jnp.float32) * 0.05

    fwd = jax.jit(ada_layer_norm_zero)
    outs = fwd(x, cond, emb_weight, emb_bias, linear_weight, linear_bias)
    outs = jax.block_until_ready(outs)

    refs = _reference(x, cond, emb_weight, emb_bias, linear_weight, linear_bias)
    for o, r in zip(outs, refs):
        assert o.shape == r.shape, f"shape mismatch {o.shape} vs {r.shape}"
        assert jnp.allclose(o, r, atol=1e-5, rtol=1e-5), "mismatch vs reference"

    print("KERNEL_OK")
</pallas_src>

<mosaic_0001>
module attributes {stable_mosaic.version = 11 : i64} {
  func.func @_cond_mlp_kernel(%arg0: i32, %arg1: memref<2x32xf32, #tpu.memory_space<vmem>>, %arg2: memref<32x32xf32, #tpu.memory_space<vmem>>, %arg3: memref<1x32xf32, #tpu.memory_space<vmem>>, %arg4: memref<6x32x32xf32, #tpu.memory_space<vmem>>, %arg5: memref<6x1x32xf32, #tpu.memory_space<vmem>>, %arg6: memref<2x1x32xf32, #tpu.memory_space<vmem>>, %arg7: memref<2x1x32xf32, #tpu.memory_space<vmem>>, %arg8: memref<2x32xf32, #tpu.memory_space<vmem>>, %arg9: memref<2x32xf32, #tpu.memory_space<vmem>>, %arg10: memref<2x32xf32, #tpu.memory_space<vmem>>, %arg11: memref<2x32xf32, #tpu.memory_space<vmem>>) attributes {dimension_semantics = [#tpu.dimension_semantics<arbitrary>], iteration_bounds = array<i64: 1>, scalar_prefetch = 0 : i64, scratch_operands = 0 : i64, tpu.core_type = #tpu.core_type<tc>, window_params = [{pipeline_mode = #tpu.pipeline_mode<synchronous>, transform_indices = @transform_0, window_bounds = array<i64: 2, 32>}, {pipeline_mode = #tpu.pipeline_mode<synchronous>, transform_indices = @transform_1, window_bounds = array<i64: 32, 32>}, {pipeline_mode = #tpu.pipeline_mode<synchronous>, transform_indices = @transform_2, window_bounds = array<i64: 1, 32>}, {pipeline_mode = #tpu.pipeline_mode<synchronous>, transform_indices = @transform_3, window_bounds = array<i64: 6, 32, 32>}, {pipeline_mode = #tpu.pipeline_mode<synchronous>, transform_indices = @transform_4, window_bounds = array<i64: 6, 1, 32>}, {pipeline_mode = #tpu.pipeline_mode<synchronous>, transform_indices = @transform_5, window_bounds = array<i64: 2, 1, 32>}, {pipeline_mode = #tpu.pipeline_mode<synchronous>, transform_indices = @transform_6, window_bounds = array<i64: 2, 1, 32>}, {pipeline_mode = #tpu.pipeline_mode<synchronous>, transform_indices = @transform_7, window_bounds = array<i64: 2, 32>}, {pipeline_mode = #tpu.pipeline_mode<synchronous>, transform_indices = @transform_8, window_bounds = array<i64: 2, 32>}, {pipeline_mode = #tpu.pipeline_mode<synchronous>, transform_indices = @transform_9, window_bounds = array<i64: 2, 32>}, {pipeline_mode = #tpu.pipeline_mode<synchronous>, transform_indices = @transform_10, window_bounds = array<i64: 2, 32>}]} {
    %c0 = arith.constant 0 : index
    %c0_0 = arith.constant 0 : index
    %0 = vector.load %arg1[%c0, %c0_0] : memref<2x32xf32, #tpu.memory_space<vmem>>, vector<2x32xf32>
    %c0_1 = arith.constant 0 : index
    %c0_2 = arith.constant 0 : index
    %1 = vector.load %arg2[%c0_1, %c0_2] : memref<32x32xf32, #tpu.memory_space<vmem>>, vector<32x32xf32>
    %cst = arith.constant dense<0.000000e+00> : vector<2x32xf32>
    %2 = tpu.matmul %0, %1, %cst {dimension_numbers = #tpu.dot_dimension_numbers<[1], [0], [0], [1], [0, 0, 1, 1], [], []>} : vector<2x32xf32>, vector<32x32xf32>, vector<2x32xf32> -> vector<2x32xf32>
    %c0_3 = arith.constant 0 : index
    %c0_4 = arith.constant 0 : index
    %3 = vector.load %arg3[%c0_3, %c0_4] : memref<1x32xf32, #tpu.memory_space<vmem>>, vector<1x32xf32>
    %4 = vector.broadcast %3 : vector<1x32xf32> to vector<2x32xf32>
    %5 = arith.addf %2, %4 : vector<2x32xf32>
    %6 = arith.negf %5 : vector<2x32xf32>
    %7 = math.exp %6 : vector<2x32xf32>
    %cst_5 = arith.constant 1.000000e+00 : f32
    %8 = vector.broadcast %cst_5 : f32 to vector<2x32xf32>
    %9 = arith.addf %8, %7 : vector<2x32xf32>
    %10 = arith.divf %8, %9 : vector<2x32xf32>
    %11 = arith.mulf %5, %10 : vector<2x32xf32>
    %c0_6 = arith.constant 0 : index
    %c0_7 = arith.constant 0 : index
    %c0_8 = arith.constant 0 : index
    %12 = vector.load %arg4[%c0_6, %c0_7, %c0_8] : memref<6x32x32xf32, #tpu.memory_space<vmem>>, vector<1x32x32xf32>
    %13 = vector.shape_cast %12 : vector<1x32x32xf32> to vector<32x32xf32>
    %cst_9 = arith.constant dense<0.000000e+00> : vector<2x32xf32>
    %14 = tpu.matmul %11, %13, %cst_9 {dimension_numbers = #tpu.dot_dimension_numbers<[1], [0], [0], [1], [0, 0, 1, 1], [], []>} : vector<2x32xf32>, vector<32x32xf32>, vector<2x32xf32> -> vector<2x32xf32>
    %c0_10 = arith.constant 0 : index
    %c0_11 = arith.constant 0 : index
    %c0_12 = arith.constant 0 : index
    %15 = vector.load %arg5[%c0_10, %c0_11, %c0_12] : memref<6x1x32xf32, #tpu.memory_space<vmem>>, vector<1x1x32xf32>
    %16 = vector.shape_cast %15 : vector<1x1x32xf32> to vector<1x32xf32>
    %17 = vector.broadcast %16 : vector<1x32xf32> to vector<2x32xf32>
    %18 = arith.addf %14, %17 : vector<2x32xf32>
    %19 = vector.shape_cast %18 : vector<2x32xf32> to vector<2x1x32xf32>
    %c0_13 = arith.constant 0 : index
    %c0_14 = arith.constant 0 : index
    %c0_15 = arith.constant 0 : index
    %20 = vector.load %arg6[%c0_13, %c0_14, %c0_15] : memref<2x1x32xf32, #tpu.memory_space<vmem>>, vector<2x1x32xf32>
    tpu.vector_store %arg6[%c0_13, %c0_14, %c0_15], %19 {strides = array<i32>} : memref<2x1x32xf32, #tpu.memory_space<vmem>>, vector<2x1x32xf32>,
    %c1 = arith.constant 1 : index
    %c0_16 = arith.constant 0 : index
    %c0_17 = arith.constant 0 : index
    %21 = vector.load %arg4[%c1, %c0_16, %c0_17] : memref<6x32x32xf32, #tpu.memory_space<vmem>>, vector<1x32x32xf32>
    %22 = vector.shape_cast %21 : vector<1x32x32xf32> to vector<32x32xf32>
    %cst_18 = arith.constant dense<0.000000e+00> : vector<2x32xf32>
    %23 = tpu.matmul %11, %22, %cst_18 {dimension_numbers = #tpu.dot_dimension_numbers<[1], [0], [0], [1], [0, 0, 1, 1], [], []>} : vector<2x32xf32>, vector<32x32xf32>, vector<2x32xf32> -> vector<2x32xf32>
    %c1_19 = arith.constant 1 : index
    %c0_20 = arith.constant 0 : index
    %c0_21 = arith.constant 0 : index
    %24 = vector.load %arg5[%c1_19, %c0_20, %c0_21] : memref<6x1x32xf32, #tpu.memory_space<vmem>>, vector<1x1x32xf32>
    %25 = vector.shape_cast %24 : vector<1x1x32xf32> to vector<1x32xf32>
    %26 = vector.broadcast %25 : vector<1x32xf32> to vector<2x32xf32>
    %27 = arith.addf %23, %26 : vector<2x32xf32>
    %cst_22 = arith.constant 1.000000e+00 : f32
    %28 = vector.broadcast %cst_22 : f32 to vector<2x32xf32>
    %29 = arith.addf %28, %27 : vector<2x32xf32>
    %30 = vector.shape_cast %29 : vector<2x32xf32> to vector<2x1x32xf32>
    %c0_23 = arith.constant 0 : index
    %c0_24 = arith.constant 0 : index
    %c0_25 = arith.constant 0 : index
    %31 = vector.load %arg7[%c0_23, %c0_24, %c0_25] : memref<2x1x32xf32, #tpu.memory_space<vmem>>, vector<2x1x32xf32>
    tpu.vector_store %arg7[%c0_23, %c0_24, %c0_25], %30 {strides = array<i32>} : memref<2x1x32xf32, #tpu.memory_space<vmem>>, vector<2x1x32xf32>,
    %c2 = arith.constant 2 : index
    %c0_26 = arith.constant 0 : index
    %c0_27 = arith.constant 0 : index
    %32 = vector.load %arg4[%c2, %c0_26, %c0_27] : memref<6x32x32xf32, #tpu.memory_space<vmem>>, vector<1x32x32xf32>
    %33 = vector.shape_cast %32 : vector<1x32x32xf32> to vector<32x32xf32>
    %cst_28 = arith.constant dense<0.000000e+00> : vector<2x32xf32>
    %34 = tpu.matmul %11, %33, %cst_28 {dimension_numbers = #tpu.dot_dimension_numbers<[1], [0], [0], [1], [0, 0, 1, 1], [], []>} : vector<2x32xf32>, vector<32x32xf32>, vector<2x32xf32> -> vector<2x32xf32>
    %c2_29 = arith.constant 2 : index
    %c0_30 = arith.constant 0 : index
    %c0_31 = arith.constant 0 : index
    %35 = vector.load %arg5[%c2_29, %c0_30, %c0_31] : memref<6x1x32xf32, #tpu.memory_space<vmem>>, vector<1x1x32xf32>
    %36 = vector.shape_cast %35 : vector<1x1x32xf32> to vector<1x32xf32>
    %37 = vector.broadcast %36 : vector<1x32xf32> to vector<2x32xf32>
    %38 = arith.addf %34, %37 : vector<2x32xf32>
    %c0_32 = arith.constant 0 : index
    %c0_33 = arith.constant 0 : index
    %39 = vector.load %arg8[%c0_32, %c0_33] : memref<2x32xf32, #tpu.memory_space<vmem>>, vector<2x32xf32>
    tpu.vector_store %arg8[%c0_32, %c0_33], %38 {strides = array<i32>} : memref<2x32xf32, #tpu.memory_space<vmem>>, vector<2x32xf32>,
    %c3 = arith.constant 3 : index
    %c0_34 = arith.constant 0 : index
    %c0_35 = arith.constant 0 : index
    %40 = vector.load %arg4[%c3, %c0_34, %c0_35] : memref<6x32x32xf32, #tpu.memory_space<vmem>>, vector<1x32x32xf32>
    %41 = vector.shape_cast %40 : vector<1x32x32xf32> to vector<32x32xf32>
    %cst_36 = arith.constant dense<0.000000e+00> : vector<2x32xf32>
    %42 = tpu.matmul %11, %41, %cst_36 {dimension_numbers = #tpu.dot_dimension_numbers<[1], [0], [0], [1], [0, 0, 1, 1], [], []>} : vector<2x32xf32>, vector<32x32xf32>, vector<2x32xf32> -> vector<2x32xf32>
    %c3_37 = arith.constant 3 : index
    %c0_38 = arith.constant 0 : index
    %c0_39 = arith.constant 0 : index
    %43 = vector.load %arg5[%c3_37, %c0_38, %c0_39] : memref<6x1x32xf32, #tpu.memory_space<vmem>>, vector<1x1x32xf32>
    %44 = vector.shape_cast %43 : vector<1x1x32xf32> to vector<1x32xf32>
    %45 = vector.broadcast %44 : vector<1x32xf32> to vector<2x32xf32>
    %46 = arith.addf %42, %45 : vector<2x32xf32>
    %c0_40 = arith.constant 0 : index
    %c0_41 = arith.constant 0 : index
    %47 = vector.load %arg9[%c0_40, %c0_41] : memref<2x32xf32, #tpu.memory_space<vmem>>, vector<2x32xf32>
    tpu.vector_store %arg9[%c0_40, %c0_41], %46 {strides = array<i32>} : memref<2x32xf32, #tpu.memory_space<vmem>>, vector<2x32xf32>,
    %c4 = arith.constant 4 : index
    %c0_42 = arith.constant 0 : index
    %c0_43 = arith.constant 0 : index
    %48 = vector.load %arg4[%c4, %c0_42, %c0_43] : memref<6x32x32xf32, #tpu.memory_space<vmem>>, vector<1x32x32xf32>
    %49 = vector.shape_cast %48 : vector<1x32x32xf32> to vector<32x32xf32>
    %cst_44 = arith.constant dense<0.000000e+00> : vector<2x32xf32>
    %50 = tpu.matmul %11, %49, %cst_44 {dimension_numbers = #tpu.dot_dimension_numbers<[1], [0], [0], [1], [0, 0, 1, 1], [], []>} : vector<2x32xf32>, vector<32x32xf32>, vector<2x32xf32> -> vector<2x32xf32>
    %c4_45 = arith.constant 4 : index
    %c0_46 = arith.constant 0 : index
    %c0_47 = arith.constant 0 : index
    %51 = vector.load %arg5[%c4_45, %c0_46, %c0_47] : memref<6x1x32xf32, #tpu.memory_space<vmem>>, vector<1x1x32xf32>
    %52 = vector.shape_cast %51 : vector<1x1x32xf32> to vector<1x32xf32>
    %53 = vector.broadcast %52 : vector<1x32xf32> to vector<2x32xf32>
    %54 = arith.addf %50, %53 : vector<2x32xf32>
    %c0_48 = arith.constant 0 : index
    %c0_49 = arith.constant 0 : index
    %55 = vector.load %arg10[%c0_48, %c0_49] : memref<2x32xf32, #tpu.memory_space<vmem>>, vector<2x32xf32>
    tpu.vector_store %arg10[%c0_48, %c0_49], %54 {strides = array<i32>} : memref<2x32xf32, #tpu.memory_space<vmem>>, vector<2x32xf32>,
    %c5 = arith.constant 5 : index
    %c0_50 = arith.constant 0 : index
    %c0_51 = arith.constant 0 : index
    %56 = vector.load %arg4[%c5, %c0_50, %c0_51] : memref<6x32x32xf32, #tpu.memory_space<vmem>>, vector<1x32x32xf32>
    %57 = vector.shape_cast %56 : vector<1x32x32xf32> to vector<32x32xf32>
    %cst_52 = arith.constant dense<0.000000e+00> : vector<2x32xf32>
    %58 = tpu.matmul %11, %57, %cst_52 {dimension_numbers = #tpu.dot_dimension_numbers<[1], [0], [0], [1], [0, 0, 1, 1], [], []>} : vector<2x32xf32>, vector<32x32xf32>, vector<2x32xf32> -> vector<2x32xf32>
    %c5_53 = arith.constant 5 : index
    %c0_54 = arith.constant 0 : index
    %c0_55 = arith.constant 0 : index
    %59 = vector.load %arg5[%c5_53, %c0_54, %c0_55] : memref<6x1x32xf32, #tpu.memory_space<vmem>>, vector<1x1x32xf32>
    %60 = vector.shape_cast %59 : vector<1x1x32xf32> to vector<1x32xf32>
    %61 = vector.broadcast %60 : vector<1x32xf32> to vector<2x32xf32>
    %62 = arith.addf %58, %61 : vector<2x32xf32>
    %c0_56 = arith.constant 0 : index
    %c0_57 = arith.constant 0 : index
    %63 = vector.load %arg11[%c0_56, %c0_57] : memref<2x32xf32, #tpu.memory_space<vmem>>, vector<2x32xf32>
    tpu.vector_store %arg11[%c0_56, %c0_57], %62 {strides = array<i32>} : memref<2x32xf32, #tpu.memory_space<vmem>>, vector<2x32xf32>,
    return
  }
  func.func @transform_0(%arg0: i32) -> (i32, i32) {
    %c0_i32 = arith.constant 0 : i32
    %c0_i32_0 = arith.constant 0 : i32
    %c0_i32_1 = arith.constant 0 : i32
    return %c0_i32, %c0_i32_0 : i32, i32
  }
  func.func @transform_1(%arg0: i32) -> (i32, i32) {
    %c0_i32 = arith.constant 0 : i32
    %c0_i32_0 = arith.constant 0 : i32
    %c0_i32_1 = arith.constant 0 : i32
    return %c0_i32, %c0_i32_0 : i32, i32
  }
  func.func @transform_2(%arg0: i32) -> (i32, i32) {
    %c0_i32 = arith.constant 0 : i32
    %c0_i32_0 = arith.constant 0 : i32
    %c0_i32_1 = arith.constant 0 : i32
    return %c0_i32, %c0_i32_0 : i32, i32
  }
  func.func @transform_3(%arg0: i32) -> (i32, i32, i32) {
    %c0_i32 = arith.constant 0 : i32
    %c0_i32_0 = arith.constant 0 : i32
    %c0_i32_1 = arith.constant 0 : i32
    %c0_i32_2 = arith.constant 0 : i32
    return %c0_i32, %c0_i32_0, %c0_i32_1 : i32, i32, i32
  }
  func.func @transform_4(%arg0: i32) -> (i32, i32, i32) {
    %c0_i32 = arith.constant 0 : i32
    %c0_i32_0 = arith.constant 0 : i32
    %c0_i32_1 = arith.constant 0 : i32
    %c0_i32_2 = arith.constant 0 : i32
    return %c0_i32, %c0_i32_0, %c0_i32_1 : i32, i32, i32
  }
  func.func @transform_5(%arg0: i32) -> (i32, i32, i32) {
    %c0_i32 = arith.constant 0 : i32
    %c0_i32_0 = arith.constant 0 : i32
    %c0_i32_1 = arith.constant 0 : i32
    %c0_i32_2 = arith.constant 0 : i32
    return %c0_i32, %c0_i32_0, %c0_i32_1 : i32, i32, i32
  }
  func.func @transform_6(%arg0: i32) -> (i32, i32, i32) {
    %c0_i32 = arith.constant 0 : i32
    %c0_i32_0 = arith.constant 0 : i32
    %c0_i32_1 = arith.constant 0 : i32
    %c0_i32_2 = arith.constant 0 : i32
    return %c0_i32, %c0_i32_0, %c0_i32_1 : i32, i32, i32
  }
  func.func @transform_7(%arg0: i32) -> (i32, i32) {
    %c0_i32 = arith.constant 0 : i32
    %c0_i32_0 = arith.constant 0 : i32
    %c0_i32_1 = arith.constant 0 : i32
    return %c0_i32, %c0_i32_0 : i32, i32
  }
  func.func @transform_8(%arg0: i32) -> (i32, i32) {
    %c0_i32 = arith.constant 0 : i32
    %c0_i32_0 = arith.constant 0 : i32
    %c0_i32_1 = arith.constant 0 : i32
    return %c0_i32, %c0_i32_0 : i32, i32
  }
  func.func @transform_9(%arg0: i32) -> (i32, i32) {
    %c0_i32 = arith.constant 0 : i32
    %c0_i32_0 = arith.constant 0 : i32
    %c0_i32_1 = arith.constant 0 : i32
    return %c0_i32, %c0_i32_0 : i32, i32
  }
  func.func @transform_10(%arg0: i32) -> (i32, i32) {
    %c0_i32 = arith.constant 0 : i32
    %c0_i32_0 = arith.constant 0 : i32
    %c0_i32_1 = arith.constant 0 : i32
    return %c0_i32, %c0_i32_0 : i32, i32
  }
}

module attributes {stable_mosaic.version = 11 : i64} {
  func.func @_ln_modulate_kernel(%arg0: i32, %arg1: i32, %arg2: memref<1x8x32xf32, #tpu.memory_space<vmem>>, %arg3: memref<1x1x32xf32, #tpu.memory_space<vmem>>, %arg4: memref<1x1x32xf32, #tpu.memory_space<vmem>>, %arg5: memref<1x8x32xf32, #tpu.memory_space<vmem>>) attributes {dimension_semantics = [#tpu.dimension_semantics<parallel>, #tpu.dimension_semantics<parallel>], iteration_bounds = array<i64: 2, 1>, scalar_prefetch = 0 : i64, scratch_operands = 0 : i64, tpu.core_type = #tpu.core_type<tc>, window_params = [{transform_indices = @transform_0, window_bounds = array<i64: 1, 8, 32>}, {transform_indices = @transform_1, window_bounds = array<i64: 1, 1, 32>}, {transform_indices = @transform_2, window_bounds = array<i64: 1, 1, 32>}, {transform_indices = @transform_3, window_bounds = array<i64: 1, 8, 32>}]} {
    %c0 = arith.constant 0 : index
    %c0_0 = arith.constant 0 : index
    %c0_1 = arith.constant 0 : index
    %0 = vector.load %arg2[%c0, %c0_0, %c0_1] : memref<1x8x32xf32, #tpu.memory_space<vmem>>, vector<1x8x32xf32>
    %cst = arith.constant dense<0.000000e+00> : vector<1x8xf32>
    %1 = vector.multi_reduction <add>, %0, %cst [2] : vector<1x8x32xf32> to vector<1x8xf32>
    %2 = vector.shape_cast %1 : vector<1x8xf32> to vector<1x8x1xf32>
    %cst_2 = arith.constant 3.200000e+01 : f32
    %3 = vector.broadcast %cst_2 : f32 to vector<1x8x1xf32>
    %4 = arith.divf %2, %3 : vector<1x8x1xf32>
    %5 = vector.broadcast %4 : vector<1x8x1xf32> to vector<1x8x32xf32>
    %6 = arith.subf %0, %5 : vector<1x8x32xf32>
    %7 = arith.mulf %6, %6 : vector<1x8x32xf32>
    %cst_3 = arith.constant dense<0.000000e+00> : vector<1x8xf32>
    %8 = vector.multi_reduction <add>, %7, %cst_3 [2] : vector<1x8x32xf32> to vector<1x8xf32>
    %9 = vector.shape_cast %8 : vector<1x8xf32> to vector<1x8x1xf32>
    %cst_4 = arith.constant 3.200000e+01 : f32
    %10 = vector.broadcast %cst_4 : f32 to vector<1x8x1xf32>
    %11 = arith.divf %9, %10 : vector<1x8x1xf32>
    %12 = vector.broadcast %4 : vector<1x8x1xf32> to vector<1x8x32xf32>
    %13 = arith.subf %0, %12 : vector<1x8x32xf32>
    %cst_5 = arith.constant 9.99999997E-7 : f32
    %14 = vector.broadcast %cst_5 : f32 to vector<1x8x1xf32>
    %15 = arith.addf %11, %14 : vector<1x8x1xf32>
    %16 = math.rsqrt %15 : vector<1x8x1xf32>
    %17 = vector.broadcast %16 : vector<1x8x1xf32> to vector<1x8x32xf32>
    %18 = arith.mulf %13, %17 : vector<1x8x32xf32>
    %c0_6 = arith.constant 0 : index
    %c0_7 = arith.constant 0 : index
    %c0_8 = arith.constant 0 : index
    %19 = vector.load %arg4[%c0_6, %c0_7, %c0_8] : memref<1x1x32xf32, #tpu.memory_space<vmem>>, vector<1x1x32xf32>
    %20 = vector.broadcast %19 : vector<1x1x32xf32> to vector<1x8x32xf32>
    %21 = arith.mulf %18, %20 : vector<1x8x32xf32>
    %c0_9 = arith.constant 0 : index
    %c0_10 = arith.constant 0 : index
    %c0_11 = arith.constant 0 : index
    %22 = vector.load %arg3[%c0_9, %c0_10, %c0_11] : memref<1x1x32xf32, #tpu.memory_space<vmem>>, vector<1x1x32xf32>
    %23 = vector.broadcast %22 : vector<1x1x32xf32> to vector<1x8x32xf32>
    %24 = arith.addf %21, %23 : vector<1x8x32xf32>
    %c0_12 = arith.constant 0 : index
    %c0_13 = arith.constant 0 : index
    %c0_14 = arith.constant 0 : index
    %25 = vector.load %arg5[%c0_12, %c0_13, %c0_14] : memref<1x8x32xf32, #tpu.memory_space<vmem>>, vector<1x8x32xf32>
    tpu.vector_store %arg5[%c0_12, %c0_13, %c0_14], %24 {strides = array<i32>} : memref<1x8x32xf32, #tpu.memory_space<vmem>>, vector<1x8x32xf32>,
    return
  }
  func.func @transform_0(%arg0: i32, %arg1: i32) -> (i32, i32, i32) {
    %c0_i32 = arith.constant 0 : i32
    %c0_i32_0 = arith.constant 0 : i32
    return %arg0, %arg1, %c0_i32 : i32, i32, i32
  }
  func.func @transform_1(%arg0: i32, %arg1: i32) -> (i32, i32, i32) {
    %c0_i32 = arith.constant 0 : i32
    %c0_i32_0 = arith.constant 0 : i32
    %c0_i32_1 = arith.constant 0 : i32
    return %arg0, %c0_i32, %c0_i32_0 : i32, i32, i32
  }
  func.func @transform_2(%arg0: i32, %arg1: i32) -> (i32, i32, i32) {
    %c0_i32 = arith.constant 0 : i32
    %c0_i32_0 = arith.constant 0 : i32
    %c0_i32_1 = arith.constant 0 : i32
    return %arg0, %c0_i32, %c0_i32_0 : i32, i32, i32
  }
  func.func @transform_3(%arg0: i32, %arg1: i32) -> (i32, i32, i32) {
    %c0_i32 = arith.constant 0 : i32
    %c0_i32_0 = arith.constant 0 : i32
    return %arg0, %arg1, %c0_i32 : i32, i32, i32
  }
}

</mosaic_0001>

<bundles_post_ra>
// kernel: ada_layer_norm_zero.3
= control target key start
LH: loop header
LB: loop body
LE: loop exit
PB: predicated region body
PF: predicated region fallthrough
CT: control target
= control target key end

     0   :  { %8 = vsyncpa [#allocation3], 0  ;;  %s648_s0 = inlined_call_operand.vmem [shape: f32[2,8,32], index: 0, kind: input, shape index: {}]   ;;  %s649_s1 = inlined_call_operand.vmem [shape: f32[2,1,32], index: 1, kind: input, shape index: {}]   ;;  %s650_s2 = inlined_call_operand.vmem [shape: f32[2,1,32], index: 2, kind: input, shape index: {}]   ;;  %s651_s3 = inlined_call_operand.hbm [shape: f32[2,8,32], index: 3, kind: output, shape index: {}]  }
   0x1   :  { %10 = vsyncpa [#allocation3 + $0x1], 0  ;;  %s527_s12 = smov 0   ;;  %s529_s13 = smov 0  }
   0x2   :  { %s531_s14 = smov 0   ;;  %s533_s15 = smov 0  }
   0x3   :  { %s535_s16 = smov 0   ;;  %s537_s17 = smov 0  }
   0x4 LB: > { %s356_s18 = sadd.s32 4294967295, %s504_s17   ;;  %s357_s19 = sadd.s32 4294967294, %s504_s17   ;;  %s504_s17 = sphi %s537_s17, %s16_s17   ;;  %s500_s16 = sphi %s535_s16, %s658_s16   ;;  %s496_s15 = sphi %s533_s15, %s657_s15   ;;  %s492_s14 = sphi %s531_s14, %s656_s14   ;;  %s488_s13 = sphi %s529_s13, %s655_s13   ;;  %s484_s12 = sphi %s527_s12, %s654_s12  }
   0x5   : > { %s28_s20 = sadd.s32 1, %s500_s16  ;;  %s117_s21 = sadd.s32 1, %s492_s14 }
   0x6   : > { %p30_p0 = scmp.ge.s32.totalorder %s28_s20, 2  ;;  %p127_p1 = scmp.ne.s32.totalorder %s492_s14, %s488_s13 }
   0x7   : > { %p128_p2 = scmp.eq.s32.totalorder %s356_s18, 1  ;;  %p133_p3 = scmp.ne.s32.totalorder %s488_s13, %s484_s12 }
   0x8   : > { %s660_s20 = smov (%p30_p0, %s28_s20), 0  ;;  %p134_p5 = scmp.eq.s32.totalorder %s357_s19, 1 }
   0x9   : > { %p567_p4 = por %p128_p2, %p127_p1  ;;  %s112_s23 = ssub.s32 %s500_s16, %s660_s20 }
   0xa   : > { %p360_p6 = scmp.ge.s32.totalorder %s504_s17, 1  ;;  %p115_p7 = scmp.eq.s32.totalorder %s112_s23, 0 }
   0xb   : > { %p574_p8 = por %p134_p5, %p133_p3  ;;  %p174_p9 = scmp.lt.s32.totalorder %s504_s17, 3 }
   0xc   : > { %s580_s25 = scalar_select %p115_p7, %s492_s14, %s117_s21  }
   0xd   : > { %p175_p10 = pnand %p360_p6, %p174_p9 }
   0xe   : > { %p206_p11 = scmp.lt.s32.totalorder (!%p175_p10), %s496_s15, 1  ;;  %vm220_vm0 = vcmask (!%p175_p10), 261120   ;;  %s203_s4 = sand.u32 (!%p175_p10), 1, %s488_s13  }
   0xf   : > { %178 = sbr.rel (%p175_p10) target bundleno = 354 (0x162), region = 32  ;;  %s361_s5 = sshll.u32 (!%p175_p10), %s203_s4, 3 }
  0x10   : > { %s366_s18 = sshll.u32 (!%p175_p10), %s496_s15, 7  ;;  %s205_s19 = scalar_lea.vmem (!%p175_p10), [#allocation2], %s361_s5 }
  0x11   : > { %s267_s21 = sshll.u32 (!%p175_p10), %s205_s19, 4  ;;  %s600_s28 = scalar_lea.hbm (!%p175_p10), %s651_s3, %s366_s18  ;;  %s602_s21 = int_to_ptr.vmem [resolvable:$true] %s267_s21 }
  0x12   : > { %s426_s29 = scalar_lea.vmem (!%p175_p10), %s602_s21, 128 }
  0x13   : > { %p427_p12 = scmp.ne.s32.totalorder (!%p175_p10), %s602_s21, %s426_s29 }
  0x15   : > { %p428_p13 = pnand (!%p175_p10), %p427_p12, %p567_p4 }
  0x16   : > { %s207_s26 = scalar_select %p206_p11, %s496_s15, 1 }
  0x17   : > { %p429_p0 = pneg %p428_p13  ;;  %s506_s15 = smov [#allocation2]  }
  0x18   : > { %s362_s27 = sshll.u32 %s207_s26, 3  ;;  %s218_s8 = scalar_lea.vmem %s650_s2, %s207_s26 }
  0x19   : > { %s212_s30 = scalar_lea.vmem %s648_s0, %s362_s27  ;;  %s215_s11 = scalar_lea.vmem %s649_s1, %s207_s26  ;;  %v363_v11 = vld [vmem:[%s218_s8] ss:$0 sm:$0xff] }
  0x1a   : > { %v219_v0 = vld [vmem:[%s212_s30] sm:$0xff]  ;;  %s253_s26 = scalar_lea.sflag [#allocation3], %s203_s4  ;;  %s430_s30 = sshll.u32 %s506_s15, 4  ;;  %s431_s30 = int_to_ptr.vmem [resolvable:$false] %s430_s30 }
  0x1b   : > { %v221_v1 = vsel %vm220_vm0, %v219_v0, 0.0  ;;  %v364_v13 = vld [vmem:[%s215_s11] ss:$0 sm:$0xff]  ;;  %s432_s5 = scalar_lea.vmem %s431_s30, 256  ;;  %p433_p1 = scmp.lt.s32.totalorder %s602_s21, %s431_s30 }
  0x1c   : > { %222 = vadd.xlane.f32.xlu0 %v221_v1  ;;  %p434_p2 = scmp.lt.s32.totalorder %s432_s5, %s426_s29 }
  0x1e   : > { %p435_p3 = por %p434_p2, %p433_p1 }
  0x20   : > { %p436_p5 = pnand %p435_p3, %p429_p0 }
  0xa9   : > { %v223_v2 = vpop.xlane.xlu0 %222 }
  0xaa   : > { %v225_v3 = vmul.f32 0.03125, %v223_v2 }
  0xac   : > { %v226_v4 = vsub.f32 %v219_v0, %v225_v3 }
  0xae   : > { %v227_v5 = vmul.f32 %v226_v4, %v226_v4 }
  0xb0   : > { %v228_v6 = vsel %vm220_vm0, %v227_v5, 0.0 }
  0xb1   : > { %229 = vadd.xlane.f32.xlu0 %v228_v6 }
 0x13e   : > { %v230_v7 = vpop.xlane.xlu0 %229 }
 0x13f   : > { %v231_v8 = vmul.f32 0.03125, %v230_v7 }
 0x141   : > { %v232_v9 = vadd.f32 1e-06, %v231_v8 }
 0x143   : > { %424 = vrsqrt.f32 %v232_v9 }
 0x14d   : > { %v425_v10 = vpop.eup %424 }
 0x14e   : > { %v234_v12 = vmul.f32 %v425_v10, %v226_v4 }
 0x150   : > { %v242_v14 = vmul.f32 %v363_v11, %v234_v12 }
 0x152   : > { %v250_v15 = vadd.f32 %v364_v13, %v242_v14 }
 0x154   : > { %251 = vst.msk [vmem:[%s205_s19] sm:$0xff] %vm220_vm0, %v250_v15 }
 0x155   : > { %439 = shalt.err (!%p436_p5)
}
 0x156   : > { %s440_s4 = scalar_lea.hbm %s600_s28, 128  ;;  %s444_s8 = scalar_lea.hbm %s651_s3, 256 }
 0x157   : > { %p441_p6 = scmp.ne.s32.totalorder %s600_s28, %s440_s4  ;;  %p445_p10 = scmp.lt.u32.totalorder %s600_s28, %s651_s3 }
 0x158   : > { %p446_p11 = scmp.lt.u32.totalorder %s444_s8, %s440_s4  ;;  %p448_p13 = scmp.lt.u32.totalorder %s440_s4, %s600_s28 }
 0x159   : > { %p442_p7 = pnand %p441_p6, %p567_p4 }
 0x15a   : > { %p447_p12 = por %p446_p11, %p445_p10 }
 0x15b   : > { %p443_p9 = pneg %p442_p7 }
 0x15c   : > { %p449_p0 = por %p448_p13, %p447_p12 }
 0x15e   : > { %p450_p1 = pnand %p449_p0, %p443_p9 }
 0x160   : > { %453 = shalt.err (!%p450_p1)
}
 0x161   : > { %369 = dma.vmem_to_hbm [thread:$0]  (%p567_p4), %s602_s21, 128, %s600_s28, %s253_s26  }
 0x162 PF: > { %p375_p2 = scmp.ge.s32.totalorder %s504_s17, 2  ;;  %s279_s11 = sand.u32 1, %s484_s12  }
 0x163   : > { %s280_s18 = scalar_lea.sflag [#allocation3], %s279_s11 }
 0x164   : > { %p372_p3 = pnand %p375_p2, %p574_p8 }
 0x166   : > { %479 = dma.done.wait (!%p372_p3), %s280_s18, 128  }
 0x167   : > { %481 = vsyncadd (!%p372_p3), %s280_s18, 4294967168  ;;  %s16_s17 = sadd.s32 1, %s504_s17   ;;  %s654_s12 = smov %s488_s13 }
 0x168   : > { %p13_p5 = scmp.ge.s32.totalorder %s16_s17, 4   ;;  %s655_s13 = smov %s492_s14 }
 0x169   : > { %s656_s14 = smov %s580_s25  ;;  %s657_s15 = smov %s500_s16 }
 0x16a   : > { %s658_s16 = smov %s660_s20  ;;  %15 = sbr.rel (!%p13_p5) target bundleno = 4 (0x4), region = 73 }
 0x171   :  { %285 = vsyncpa [#allocation3], 1 }
 0x172   :  { %287 = vsyncpa [#allocation3 + $0x1], 1 }

// kernel: ada_layer_norm_zero.2
= control target key start
LH: loop header
LB: loop body
LE: loop exit
PB: predicated region body
PF: predicated region fallthrough
CT: control target
= control target key end

     0   :  { %16 = vsyncpa [#allocation3], 0  ;;  %s1326_s0 = inlined_call_operand.vmem [shape: f32[2,32], index: 0, kind: input, shape index: {}]   ;;  %s1327_s1 = inlined_call_operand.vmem [shape: f32[32,32], index: 1, kind: input, shape index: {}]   ;;  %s1328_s2 = inlined_call_operand.vmem [shape: f32[1,32], index: 2, kind: input, shape index: {}]   ;;  %s1329_s3 = inlined_call_operand.vmem [shape: f32[6,32,32], index: 3, kind: input, shape index: {}]   ;;  %s1330_s4 = inlined_call_operand.vmem [shape: f32[6,1,32], index: 4, kind: input, shape index: {}]   ;;  %s1331_s5 = inlined_call_operand.vmem [shape: f32[2,1,32], index: 5, kind: output, shape index: {0}]   ;;  %s1332_s6 = inlined_call_operand.vmem [shape: f32[2,1,32], index: 6, kind: output, shape index: {1}]   ;;  %s1333_s7 = inlined_call_operand.hbm [shape: f32[2,32], index: 7, kind: output, shape index: {2}]   ;;  %s1334_s8 = inlined_call_operand.hbm [shape: f32[2,32], index: 8, kind: output, shape index: {3}]   ;;  %s1335_s9 = inlined_call_operand.hbm [shape: f32[2,32], index: 9, kind: output, shape index: {4}]   ;;  %s1336_s10 = inlined_call_operand.hbm [shape: f32[2,32], index: 10, kind: output, shape index: {5}]  }
   0x1   :  { %17 = vsyncpa [#allocation5], 0  ;;  %v30_v0 = vld [vmem:[%s1327_s1] sm:$0xff]  ;;  %v31_v1 = vld [vmem:[%s1327_s1 + $0x8] sm:$0xff]  ;;  %v1045_v3 = vmov 0.0|0.0   ;;  %vm1046_vm0 = vmmov 0  }
   0x2   :  { %v32_v2 = vld [vmem:[%s1327_s1 + $0x10] sm:$0xff]  ;;  %897 = vmatprep.subr.bf16.mxu0 %v1045_v3  ;;  %v898_v4 = vpack.c.bf16 %v31_v1, %v30_v0  ;;  %v33_v5 = vld [vmem:[%s1327_s1 + $0x18] sm:$0xff]  ;;  %v1047_v6 = vmov 0.0   ;;  %903 = vmatprep.subr.bf16.mxu1 %v1045_v3 }
   0x3   :  { %828 = vmatprep.mubr.msk.f32.mxu0 %vm1046_vm0, %v1047_v6  ;;  %839 = vmatprep.mubr.msk.f32.mxu1 %vm1046_vm0, %v1047_v6 }
   0x4   :  { %18 = vsyncpa [#allocation8], 0  ;;  %899 = vmatpush3.bf16.msra.mxu0 %v898_v4  ;;  %v901_v7 = vpack.c.bf16 %v33_v5, %v32_v2  ;;  %v29_v8 = vld [vmem:[%s1326_s0] sm:$0x3]  ;;  %vm41_vm1 = vcmask 261120   ;;  %v123_v10 = vld [vmem:[%s1329_s3 + $0x8] sm:$0xff]  ;;  %v210_v56 = vlaneseq }
   0x5   :  { %900 = vmatprep.subr.bf16.mxu0 %v1045_v3  ;;  %v122_v9 = vld [vmem:[%s1329_s3] sm:$0xff]  ;;  %v751_v13 = vld [vmem:[%s1329_s3 + $0x28] sm:$0xff]  ;;  %v124_v15 = vld [vmem:[%s1329_s3 + $0x10] sm:$0xff]  ;;  %v1048_v54 = vmov 1966171168   ;;  %vm231_vm2 = vcmask 253952  }
   0x6   :  { %v750_v11 = vld [vmem:[%s1329_s3 + $0x20] sm:$0xff]  ;;  %v904_v12 = vpack.c.bf16 %v123_v10, %v122_v9  ;;  %v125_v16 = vld [vmem:[%s1329_s3 + $0x18] sm:$0xff]  ;;  %v752_v17 = vld [vmem:[%s1329_s3 + $0x30] sm:$0xff]  ;;  %v208_v55 = vunpack.c.l.s4 %v1048_v54  ;;  %v211_v58 = vshrl.u32 %v210_v56, 7  ;;  %s1049_s12 = smov [#allocation4]   ;;  %s1050_s16 = smov [#allocation2]  }
   0x7   :  { %v910_v14 = vpack.c.bf16 %v751_v13, %v750_v11  ;;  %v907_v18 = vpack.c.bf16 %v125_v16, %v124_v15  ;;  %v753_v19 = vld [vmem:[%s1329_s3 + $0x38] sm:$0xff]  ;;  %v745_v21 = vld [vmem:[%s1328_s2] ss:$0 sm:$0xff]  ;;  %v758_v29 = vld [vmem:[%s1329_s3 + $0x48] sm:$0xff]  ;;  %s702_s13 = sshll.u32 %s1049_s12, 4  ;;  %s692_s17 = sshll.u32 %s1050_s16, 4  ;;  %s703_s13 = int_to_ptr.vmem [resolvable:$true] %s702_s13  ;;  %s1257_s17 = int_to_ptr.vmem [resolvable:$true] %s692_s17 }
   0x8   :  { %902 = vmatpush3.bf16.msra.mxu0 %v901_v7  ;;  %905 = vmatpush3.bf16.msra.mxu1 %v904_v12  ;;  %v913_v20 = vpack.c.bf16 %v753_v19, %v752_v17  ;;  %v757_v28 = vld [vmem:[%s1329_s3 + $0x40] sm:$0xff]  ;;  %v765_v31 = vld [vmem:[%s1329_s3 + $0x68] sm:$0xff]  ;;  %v759_v35 = vld [vmem:[%s1329_s3 + $0x50] sm:$0xff]  ;;  %v209_v57 = vunpack.c.0.s8 %v208_v55  ;;  %vm428_vm3 = vcmask 254976   ;;  %p956_p1 = scmp.lt.s32.totalorder %s703_s13, %s703_s13 }
   0x9   :  { %909 = vmatprep.subr.bf16.mxu0 %v1045_v3  ;;  %906 = vmatprep.subr.bf16.mxu1 %v1045_v3  ;;  %v764_v30 = vld [vmem:[%s1329_s3 + $0x60] sm:$0xff]  ;;  %v916_v33 = vpack.c.bf16 %v758_v29, %v757_v28  ;;  %v760_v37 = vld [vmem:[%s1329_s3 + $0x58] sm:$0xff]  ;;  %v766_v38 = vld [vmem:[%s1329_s3 + $0x70] sm:$0xff] }
   0xa   :  { %v922_v34 = vpack.c.bf16 %v765_v31, %v764_v30  ;;  %v767_v39 = vld [vmem:[%s1329_s3 + $0x78] sm:$0xff]  ;;  %v919_v40 = vpack.c.bf16 %v760_v37, %v759_v35  ;;  %v771_v42 = vld [vmem:[%s1329_s3 + $0x80] sm:$0xff]  ;;  %v772_v43 = vld [vmem:[%s1329_s3 + $0x88] sm:$0xff]  ;;  %v212_v61 = vsub.s32 %v209_v57, %v211_v58 }
   0xb   :  { %829 = vmatmul.mubr.msk.f32.vlgmr.msra.gmra.mrb[0].mxu0 %vm41_vm1, %v29_v8  ;;  %v925_v41 = vpack.c.bf16 %v767_v39, %v766_v38  ;;  %v778_v44 = vld [vmem:[%s1329_s3 + $0xa0] sm:$0xff]  ;;  %v779_v45 = vld [vmem:[%s1329_s3 + $0xa8] sm:$0xff]  ;;  %v928_v46 = vpack.c.bf16 %v772_v43, %v771_v42  ;;  %v773_v48 = vld [vmem:[%s1329_s3 + $0x90] sm:$0xff] }
   0xc   :  { %850 = vmatprep.mubr.msk.f32.mxu0 %vm1046_vm0, %v1047_v6  ;;  %911 = vmatpush3.bf16.msra.mxu0 %v910_v14  ;;  %v934_v47 = vpack.c.bf16 %v779_v45, %v778_v44  ;;  %v774_v49 = vld [vmem:[%s1329_s3 + $0x98] sm:$0xff]  ;;  %v780_v50 = vld [vmem:[%s1329_s3 + $0xb0] sm:$0xff]  ;;  %v748_v59 = vld [vmem:[%s1330_s4] ss:$0 sm:$0xff] }
   0xd   :  { %912 = vmatprep.subr.bf16.mxu0 %v1045_v3  ;;  %908 = vmatpush3.bf16.msra.mxu1 %v907_v18  ;;  %v781_v51 = vld [vmem:[%s1329_s3 + $0xb8] sm:$0xff]  ;;  %v931_v52 = vpack.c.bf16 %v774_v49, %v773_v48  ;;  %v755_v60 = vld [vmem:[%s1330_s4 + $0x1] ss:$0 sm:$0xff]  ;;  %v762_v9 = vld [vmem:[%s1330_s4 + $0x2] ss:$0 sm:$0xff] }
   0xe   :  { %915 = vmatprep.subr.bf16.mxu1 %v1045_v3  ;;  %v937_v53 = vpack.c.bf16 %v781_v51, %v780_v50  ;;  %v769_v10 = vld [vmem:[%s1330_s4 + $0x3] ss:$0 sm:$0xff] }
  0x10   :  { %914 = vmatpush3.bf16.msra.mxu0 %v913_v20 }
  0x11   :  { %921 = vmatprep.subr.bf16.mxu0 %v1045_v3 }
  0xde   :  { %v111_v22 = vpop.f32.mrb[0].mxu0 }
  0xdf   :  { %v112_v23 = vadd.f32 %v745_v21, %v111_v22  ;;  %v830_v24 = vpop.f32.mrb[1].mxu0 }
  0xe1   :  { %v747_v25 = vmul.f32 -1.442695, %v112_v23 }
  0xe3   :  { %947 = vpow2.f32 %v747_v25 }
  0xed   :  { %v948_v26 = vpop.eup %947 }
  0xee   :  { %v118_v27 = vadd.f32 1.0, %v948_v26 }
  0xf0   :  { %949 = vrcp.f32 %v118_v27 }
  0xfa   :  { %v950_v32 = vpop.eup %949 }
  0xfb   :  { %v121_v36 = vmul.f32 %v950_v32, %v112_v23 }
  0xfd   :  { %840 = vmatmul.mubr.msk.f32.vlgmr.msra.gmra.mrb[0].mxu1 %vm41_vm1, %v121_v36  ;;  %851 = vmatmul.mubr.msk.f32.vlgmr.msra.gmra.mrb[2].mxu0 %vm41_vm1, %v121_v36 }
  0xfe   :  { %917 = vmatpush3.bf16.msra.mxu1 %v916_v33  ;;  %923 = vmatpush3.bf16.msra.mxu0 %v922_v34 }
  0xff   :  { %918 = vmatprep.subr.bf16.mxu1 %v1045_v3  ;;  %924 = vmatprep.subr.bf16.mxu0 %v1045_v3 }
 0x100   :  { %861 = vmatprep.mubr.msk.f32.mxu1 %vm1046_vm0, %v1047_v6  ;;  %872 = vmatprep.mubr.msk.f32.mxu0 %vm1046_vm0, %v1047_v6 }
 0x102   :  { %920 = vmatpush3.bf16.msra.mxu1 %v919_v40  ;;  %926 = vmatpush3.bf16.msra.mxu0 %v925_v41 }
 0x103   :  { %927 = vmatprep.subr.bf16.mxu1 %v1045_v3  ;;  %933 = vmatprep.subr.bf16.mxu0 %v1045_v3 }
 0x105   :  { %862 = vmatmul.mubr.msk.f32.vlgmr.msra.gmra.mrb[2].mxu1 %vm41_vm1, %v121_v36  ;;  %873 = vmatmul.mubr.msk.f32.vlgmr.msra.gmra.mrb[4].mxu0 %vm41_vm1, %v121_v36 }
 0x106   :  { %929 = vmatpush3.bf16.msra.mxu1 %v928_v46  ;;  %935 = vmatpush3.bf16.msra.mxu0 %v934_v47 }
 0x107   :  { %930 = vmatprep.subr.bf16.mxu1 %v1045_v3  ;;  %936 = vmatprep.subr.bf16.mxu0 %v1045_v3 }
 0x108   :  { %883 = vmatprep.mubr.msk.f32.mxu1 %vm1046_vm0, %v1047_v6  ;;  %894 = vmatprep.mubr.msk.f32.mxu0 %vm1046_vm0, %v1047_v6 }
 0x10a   :  { %932 = vmatpush3.bf16.msra.mxu1 %v931_v52  ;;  %938 = vmatpush3.bf16.msra.mxu0 %v937_v53 }
 0x10d   :  { %884 = vmatmul.mubr.msk.f32.vlgmr.msra.gmra.mrb[4].mxu1 %vm41_vm1, %v121_v36  ;;  %895 = vmatmul.mubr.msk.f32.vlgmr.msra.gmra.mrb[6].mxu0 %vm41_vm1, %v121_v36 }
 0x1d0   :  { %v202_v62 = vpop.f32.mrb[0].mxu1  ;;  %v313_v63 = vpop.f32.mrb[2].mxu0 }
 0x1d1   :  { %v203_v0 = vadd.f32 %v748_v59, %v202_v62  ;;  %v314_v1 = vadd.f32 %v755_v60, %v313_v63  ;;  %v841_v2 = vpop.f32.mrb[1].mxu1  ;;  %v852_v3 = vpop.f32.mrb[3].mxu0 }
 0x1d3   :  { %v213_v4 = vrot.slane %v203_v0, %v212_v61  ;;  %v317_v5 = vadd.f32 1.0, %v314_v1 }
 0x1d5   :  { %v214_v6 = vcombine.high %v213_v4, %v213_v4  ;;  %v221_v7 = vrot.slane %v213_v4, %v212_v61  ;;  %v325_v8 = vrot.slane %v317_v5, %v212_v61 }
 0x1d7   :  { %v228_v11 = vrot.slane %v214_v6, %v212_v61  ;;  %232 = vst.msk [vmem:[%s1331_s5] sm:$0x1] %vm231_vm2, %v221_v7  ;;  %v326_v12 = vcombine.high %v325_v8, %v325_v8  ;;  %v333_v13 = vrot.slane %v325_v8, %v212_v61 }
 0x1d8   :  { %v424_v14 = vpop.f32.mrb[2].mxu1  ;;  %v509_v15 = vpop.f32.mrb[4].mxu0 }
 0x1d9   :  { %233 = vst.msk [vmem:[%s1331_s5 + $0x1] sm:$0x1] %vm231_vm2, %v228_v11  ;;  %v340_v16 = vrot.slane %v326_v12, %v212_v61  ;;  %343 = vst.msk [vmem:[%s1332_s6] sm:$0x1] %vm231_vm2, %v333_v13  ;;  %v425_v17 = vadd.f32 %v762_v9, %v424_v14  ;;  %v510_v18 = vadd.f32 %v769_v10, %v509_v15  ;;  %v863_v19 = vpop.f32.mrb[3].mxu1  ;;  %v874_v20 = vpop.f32.mrb[5].mxu0 }
 0x1da   :  { %s951_s5 = scalar_lea.vmem %s703_s13, 32 }
 0x1db   :  { %344 = vst.msk [vmem:[%s1332_s6 + $0x1] sm:$0x1] %vm231_vm2, %v340_v16  ;;  %p952_p0 = scmp.ne.s32.totalorder %s703_s13, %s951_s5  ;;  %p957_p2 = scmp.lt.s32.totalorder %s951_s5, %s951_s5 }
 0x1dc   :  { %513 = vst.msk [vmem:[#allocation4] sm:$0x3] %vm428_vm3, %v510_v18  ;;  %429 = vst.msk [vmem:[#allocation2] sm:$0x3] %vm428_vm3, %v425_v17 }
 0x1dd   :  { %p958_p3 = por %p957_p2, %p956_p1 }
 0x1df   :  { %p959_p4 = pnand %p958_p3, %p952_p0 }
 0x1e1   :  { %962 = shalt.err (!%p959_p4)
}
 0x1e2   :  { %s963_s24 = scalar_lea.hbm %s1334_s8, 32 }
 0x1e3   :  { %p964_p5 = scmp.ne.s32.totalorder %s1334_s8, %s963_s24  ;;  %p967_p6 = scmp.lt.u32.totalorder %s963_s24, %s1334_s8 }
 0x1e5   :  { %p969_p7 = pnand %p967_p6, %p964_p5 }
 0x1e7   :  { %972 = shalt.err (!%p969_p7)
}
 0x1e8   :  { %705 = dma.vmem_to_hbm [thread:$0]  %s703_s13, 32, %s1334_s8, [#allocation5]  }
 0x1e9   :  { %s973_s28 = scalar_lea.vmem %s1257_s17, 32  ;;  %p978_p9 = scmp.lt.s32.totalorder %s1257_s17, %s1257_s17 }
 0x1ea   :  { %p974_p8 = scmp.ne.s32.totalorder %s1257_s17, %s973_s28  ;;  %p979_p10 = scmp.lt.s32.totalorder %s973_s28, %s973_s28 }
 0x1ec   :  { %p980_p11 = por %p979_p10, %p978_p9 }
 0x1ee   :  { %p981_p12 = pnand %p980_p11, %p974_p8 }
 0x1f0   :  { %984 = shalt.err (!%p981_p12)
}
 0x1f1   :  { %s985_s11 = scalar_lea.hbm %s1333_s7, 32 }
 0x1f2   :  { %p986_p13 = scmp.ne.s32.totalorder %s1333_s7, %s985_s11  ;;  %p989_p0 = scmp.lt.u32.totalorder %s985_s11, %s1333_s7 }
 0x1f4   :  { %p991_p1 = pnand %p989_p0, %p986_p13 }
 0x1f6   :  { %994 = shalt.err (!%p991_p1)
}
 0x1f7   :  { %695 = dma.vmem_to_hbm [thread:$0]  %s1257_s17, 32, %s1333_s7, [#allocation3]   ;;  %v776_v21 = vld [vmem:[%s1330_s4 + $0x4] ss:$0 sm:$0xff]  ;;  %v783_v22 = vld [vmem:[%s1330_s4 + $0x5] ss:$0 sm:$0xff] }
 0x1f8   :  { %s1051_s22 = smov [#allocation6]   ;;  %s1052_s5 = smov [#allocation7]   ;;  %v593_v23 = vpop.f32.mrb[4].mxu1  ;;  %v677_v24 = vpop.f32.mrb[6].mxu0 }
 0x1f9   :  { %s712_s1 = sshll.u32 %s1051_s22, 4  ;;  %s722_s23 = sshll.u32 %s1052_s5, 4  ;;  %v594_v25 = vadd.f32 %v776_v21, %v593_v23  ;;  %v678_v26 = vadd.f32 %v783_v22, %v677_v24  ;;  %v885_v27 = vpop.f32.mrb[5].mxu1  ;;  %v896_v28 = vpop.f32.mrb[7].mxu0  ;;  %s713_s1 = int_to_ptr.vmem [resolvable:$true] %s712_s1  ;;  %s723_s23 = int_to_ptr.vmem [resolvable:$true] %s722_s23 }
 0x1fa   :  { %s995_s7 = scalar_lea.vmem %s713_s1, 32  ;;  %p1000_p3 = scmp.lt.s32.totalorder %s713_s1, %s713_s1 }
 0x1fb   :  { %597 = vst.msk [vmem:[#allocation6] sm:$0x3] %vm428_vm3, %v594_v25  ;;  %681 = vst.msk [vmem:[#allocation7] sm:$0x3] %vm428_vm3, %v678_v26  ;;  %p996_p2 = scmp.ne.s32.totalorder %s713_s1, %s995_s7  ;;  %p1001_p4 = scmp.lt.s32.totalorder %s995_s7, %s995_s7 }
 0x1fd   :  { %p1002_p5 = por %p1001_p4, %p1000_p3 }
 0x1ff   :  { %p1003_p6 = pnand %p1002_p5, %p996_p2 }
 0x201   :  { %1006 = shalt.err (!%p1003_p6)
}
 0x202   :  { %s1007_s2 = scalar_lea.hbm %s1335_s9, 32 }
 0x203   :  { %p1008_p7 = scmp.ne.s32.totalorder %s1335_s9, %s1007_s2  ;;  %p1011_p8 = scmp.lt.u32.totalorder %s1007_s2, %s1335_s9 }
 0x205   :  { %p1013_p9 = pnand %p1011_p8, %p1008_p7 }
 0x207   :  { %1016 = shalt.err (!%p1013_p9)
}
 0x208   :  { %715 = dma.vmem_to_hbm [thread:$0]  %s713_s1, 32, %s1335_s9, [#allocation5]  }
 0x209   :  { %s1017_s0 = scalar_lea.vmem %s723_s23, 32  ;;  %p1022_p11 = scmp.lt.s32.totalorder %s723_s23, %s723_s23 }
 0x20a   :  { %p1018_p10 = scmp.ne.s32.totalorder %s723_s23, %s1017_s0  ;;  %p1023_p12 = scmp.lt.s32.totalorder %s1017_s0, %s1017_s0 }
 0x20c   :  { %p1024_p13 = por %p1023_p12, %p1022_p11 }
 0x20e   :  { %p1025_p0 = pnand %p1024_p13, %p1018_p10 }
 0x210   :  { %1028 = shalt.err (!%p1025_p0)
}
 0x211   :  { %s1029_s30 = scalar_lea.hbm %s1336_s10, 32 }
 0x212   :  { %p1030_p1 = scmp.ne.s32.totalorder %s1336_s10, %s1029_s30  ;;  %p1033_p2 = scmp.lt.u32.totalorder %s1029_s30, %s1336_s10 }
 0x214   :  { %p1035_p3 = pnand %p1033_p2, %p1030_p1 }
 0x216   :  { %1038 = shalt.err (!%p1035_p3)
}
 0x217   :  { %725 = dma.vmem_to_hbm [thread:$0]  %s723_s23, 32, %s1336_s10, [#allocation8]  }
 0x218   :  { %1039 = dma.done.wait [#allocation3], 32  }
 0x219   :  { %1040 = vsyncadd [#allocation3], 4294967264 }
 0x21a   :  { %1041 = dma.done.wait [#allocation5], 64  }
 0x21b   :  { %1042 = vsyncadd [#allocation5], 4294967232 }
 0x21c   :  { %1043 = dma.done.wait [#allocation8], 32  }
 0x21d   :  { %1044 = vsyncadd [#allocation8], 4294967264 }
 0x21e   :  { %742 = vsyncpa [#allocation3], 1 }
 0x21f   :  { %743 = vsyncpa [#allocation5], 1 }
 0x220   :  { %744 = vsyncpa [#allocation8], 1 }

</bundles_post_ra>
